<compile_context>
chip_gen: v7x
topology: tpu7x:2x2x1
jax: 0.10.0
libtpu: 0.0.40
codegen_flags: <defaults>
</compile_context>

<pallas_src>
import jax
import jax.numpy as jnp
from jax.experimental import pallas as pl
from jax.experimental.pallas import tpu as pltpu

EPS = 1e-5


# ---------------- Phase 1: conv-as-matmul (channel-major) + per-tile BN partials ----
def _conv_stats_kernel(p_ref, w_ref, y_ref, sum_ref, ssq_ref):
    # p_ref: (K, THW) bf16   w_ref: (C_out, K) bf16
    # y_ref: (C_out, THW) bf16   sum_ref / ssq_ref: (C_out, 1) f32 (per-tile partials)
    y = jnp.dot(w_ref[...], p_ref[...], preferred_element_type=jnp.float32)
    y_ref[...] = y.astype(y_ref.dtype)                      # bf16 intermediate
    sum_ref[...] = jnp.sum(y, axis=1, keepdims=True)        # f32 partial sums
    ssq_ref[...] = jnp.sum(y * y, axis=1, keepdims=True)


# ---------------- Phase 2: y * scale + bias, ReLU (writes NCHW-flat directly) --------
def _norm_relu_kernel(y_ref, scale_ref, bias_ref, o_ref):
    z = y_ref[...].astype(jnp.float32) * scale_ref[...] + bias_ref[...]
    o_ref[...] = jnp.maximum(z, 0.0).astype(o_ref.dtype)


# ---------------- JAX glue ----------------
def _im2col_reflect(x, k=4, stride=2, pad=1):
    """x: (N, C, H, W) -> patchesT (N, C*k*k, H_out*W_out); K index is C-major, kh, kw."""
    N, C, H, W = x.shape
    x_pad = jnp.pad(x, ((0, 0), (0, 0), (pad, pad), (pad, pad)), mode="reflect")
    H_out = (H + 2 * pad - k) // stride + 1
    W_out = (W + 2 * pad - k) // stride + 1
    taps = []
    for kh in range(k):
        for kw in range(k):
            taps.append(x_pad[:, :, kh:kh + stride * H_out:stride,
                                     kw:kw + stride * W_out:stride])
    # (k*k, N, C, H_out, W_out) -> (N, C, k*k, H_out, W_out) -> (N, K, HW)
    pT = jnp.stack(taps, axis=0).transpose(1, 2, 0, 3, 4)
    pT = pT.reshape(N, C * k * k, H_out * W_out)
    return pT, H_out, W_out


def _pick_hw_tile(hw, k_dim):
    """Largest 128-multiple tile dividing HW, capped so the (K, THW) bf16 patch block
    double-buffered stays ~24 MiB (v7x-safe); whole image if HW < 128 / has no such
    divisor (block == full dim is always legal)."""
    budget = 12 << 20                                   # bytes per patch buffer
    max_tile = max(128, min(2048, (budget // (2 * k_dim)) // 128 * 128))
    cand = (min(max_tile, hw) // 128) * 128
    while cand >= 128:
        if hw % cand == 0:
            return cand
        cand -= 128
    return hw


@jax.jit
def block_forward(x, conv_w, bn_gamma, bn_beta):
    """x: (N, C_in, H, W); conv_w: (C_out, C_in, 4, 4) -> (N, C_out, H/2, W/2)."""
    N, C_in, H, W = x.shape
    C_out = conv_w.shape[0]
    K = C_in * 16

    # bf16 matmul operands (MXU-native); all BN / normalize math stays in f32.
    pT, H_out, W_out = _im2col_reflect(x.astype(jnp.bfloat16))
    HW = H_out * W_out
    M = N * HW                                            # BN reduction size

    THW = _pick_hw_tile(HW, K)
    n_t = HW // THW
    grid = (N, n_t)                                       # both axes carry-free

    w_mat = conv_w.reshape(C_out, K).astype(jnp.bfloat16)  # (C_out, K), no padding

    cparams = pltpu.CompilerParams(
        dimension_semantics=("parallel", "parallel"),      # megacore-friendly on v7x
        vmem_limit_bytes=48 << 20,                         # headroom on 64 MiB parts
    )

    # ---- Phase 1: per-image conv matmul + per-tile per-channel sum / sum-of-squares ----
    y, sum_p, ssq_p = pl.pallas_call(
        _conv_stats_kernel,
        out_shape=(
            jax.ShapeDtypeStruct((N, C_out, HW), jnp.bfloat16),     # conv output (bf16)
            jax.ShapeDtypeStruct((N, n_t, C_out, 1), jnp.float32),  # partial sums
            jax.ShapeDtypeStruct((N, n_t, C_out, 1), jnp.float32),  # partial sum-of-squares
        ),
        grid=grid,
        in_specs=[
            pl.BlockSpec((None, K, THW), lambda n, t: (n, 0, t)),   # patchesT tile
            pl.BlockSpec((C_out, K), lambda n, t: (0, 0)),          # weight, resident
        ],
        out_specs=(
            pl.BlockSpec((None, C_out, THW), lambda n, t: (n, 0, t)),
            pl.BlockSpec((None, None, C_out, 1), lambda n, t: (n, t, 0, 0)),
            pl.BlockSpec((None, None, C_out, 1), lambda n, t: (n, t, 0, 0)),
        ),
        compiler_params=cparams,
    )(pT, w_mat)

    # ---- Fold BN (train-mode, biased variance over full N*H*W) + affine into scale/bias ----
    ch_sum = jnp.sum(sum_p, axis=(0, 1))                  # (C_out, 1) f32
    ch_ssq = jnp.sum(ssq_p, axis=(0, 1))
    mean = ch_sum / M
    var = jnp.maximum(ch_ssq / M - mean * mean, 0.0)      # f32 accumulation, clamp >= 0
    scale = bn_gamma.astype(jnp.float32).reshape(C_out, 1) * jax.lax.rsqrt(var + EPS)
    bias = bn_beta.astype(jnp.float32).reshape(C_out, 1) - mean * scale

    # ---- Phase 2: normalize + affine + ReLU, output already in NCHW-flat layout ----
    out3 = pl.pallas_call(
        _norm_relu_kernel,
        out_shape=jax.ShapeDtypeStruct((N, C_out, HW), jnp.float32),
        grid=grid,
        in_specs=[
            pl.BlockSpec((None, C_out, THW), lambda n, t: (n, 0, t)),
            pl.BlockSpec((C_out, 1), lambda n, t: (0, 0)),
            pl.BlockSpec((C_out, 1), lambda n, t: (0, 0)),
        ],
        out_specs=pl.BlockSpec((None, C_out, THW), lambda n, t: (n, 0, t)),
        compiler_params=cparams,
    )(y, scale, bias)

    return out3.reshape(N, C_out, H_out, W_out)           # free reshape (no transpose)


def _reference(x, conv_w, bn_gamma, bn_beta):
    """Plain-JAX f32 reference of the same Block forward."""
    x_pad = jnp.pad(x, ((0, 0), (0, 0), (1, 1), (1, 1)), mode="reflect")
    y = jax.lax.conv_general_dilated(
        x_pad, conv_w, window_strides=(2, 2), padding="VALID",
        dimension_numbers=("NCHW", "OIHW", "NCHW"))
    mean = jnp.mean(y, axis=(0, 2, 3), keepdims=True)
    var = jnp.mean((y - mean) ** 2, axis=(0, 2, 3), keepdims=True)
    y_hat = (y - mean) * jax.lax.rsqrt(var + EPS)
    z = y_hat * bn_gamma.reshape(1, -1, 1, 1) + bn_beta.reshape(1, -1, 1, 1)
    return jnp.maximum(z, 0.0)


if __name__ == "__main__":
    key = jax.random.PRNGKey(0)
    k_x, k_w, k_g, k_b = jax.random.split(key, 4)

    N, C_in, H, W = 2, 4, 16, 16
    C_out = 8

    x = jax.random.normal(k_x, (N, C_in, H, W), dtype=jnp.float32)
    conv_w = 0.05 * jax.random.normal(k_w, (C_out, C_in, 4, 4), dtype=jnp.float32)
    bn_gamma = 1.0 + 0.1 * jax.random.normal(k_g, (C_out,), dtype=jnp.float32)
    bn_beta = 0.1 * jax.random.normal(k_b, (C_out,), dtype=jnp.float32)

    out = block_forward(x, conv_w, bn_gamma, bn_beta)
    jax.block_until_ready(out)
    assert out.shape == (N, C_out, H // 2, W // 2)

    ref = _reference(x, conv_w, bn_gamma, bn_beta)
    max_err = float(jnp.max(jnp.abs(out - ref)))
    # bf16 matmul operands + bf16 y intermediate vs f32 reference -> small drift.
    assert max_err < 5e-2, max_err

    print("KERNEL_OK")
</pallas_src>

<mosaic_0001>
module attributes {stable_mosaic.version = 11 : i64} {
  func.func @_conv_stats_kernel(%arg0: i32, %arg1: i32, %arg2: memref<1x64x64xbf16, #tpu.memory_space<vmem>>, %arg3: memref<8x64xbf16, #tpu.memory_space<vmem>>, %arg4: memref<1x8x64xbf16, #tpu.memory_space<vmem>>, %arg5: memref<1x1x8x1xf32, #tpu.memory_space<vmem>>, %arg6: memref<1x1x8x1xf32, #tpu.memory_space<vmem>>) attributes {dimension_semantics = [#tpu.dimension_semantics<parallel>, #tpu.dimension_semantics<parallel>], iteration_bounds = array<i64: 2, 1>, scalar_prefetch = 0 : i64, scratch_operands = 0 : i64, tpu.core_type = #tpu.core_type<tc>, window_params = [{transform_indices = @transform_0, window_bounds = array<i64: 1, 64, 64>}, {pipeline_mode = #tpu.pipeline_mode<synchronous>, transform_indices = @transform_1, window_bounds = array<i64: 8, 64>}, {transform_indices = @transform_2, window_bounds = array<i64: 1, 8, 64>}, {transform_indices = @transform_3, window_bounds = array<i64: 1, 1, 8, 1>}, {transform_indices = @transform_4, window_bounds = array<i64: 1, 1, 8, 1>}]} {
    %c0 = arith.constant 0 : index
    %c0_0 = arith.constant 0 : index
    %0 = vector.load %arg3[%c0, %c0_0] : memref<8x64xbf16, #tpu.memory_space<vmem>>, vector<8x64xbf16>
    %c0_1 = arith.constant 0 : index
    %c0_2 = arith.constant 0 : index
    %c0_3 = arith.constant 0 : index
    %1 = vector.load %arg2[%c0_1, %c0_2, %c0_3] : memref<1x64x64xbf16, #tpu.memory_space<vmem>>, vector<1x64x64xbf16>
    %2 = vector.shape_cast %1 : vector<1x64x64xbf16> to vector<64x64xbf16>
    %cst = arith.constant dense<0.000000e+00> : vector<8x64xf32>
    %3 = tpu.matmul %0, %2, %cst {dimension_numbers = #tpu.dot_dimension_numbers<[1], [0], [0], [1], [0, 0, 1, 1], [], []>} : vector<8x64xbf16>, vector<64x64xbf16>, vector<8x64xf32> -> vector<8x64xf32>
    %4 = arith.truncf %3 : vector<8x64xf32> to vector<8x64xbf16>
    %c0_4 = arith.constant 0 : index
    %c0_5 = arith.constant 0 : index
    %c0_6 = arith.constant 0 : index
    %5 = vector.load %arg4[%c0_4, %c0_5, %c0_6] : memref<1x8x64xbf16, #tpu.memory_space<vmem>>, vector<1x8x64xbf16>
    %6 = vector.shape_cast %5 : vector<1x8x64xbf16> to vector<8x64xbf16>
    %7 = vector.shape_cast %4 : vector<8x64xbf16> to vector<1x8x64xbf16>
    tpu.vector_store %arg4[%c0_4, %c0_5, %c0_6], %7 {strides = array<i32>} : memref<1x8x64xbf16, #tpu.memory_space<vmem>>, vector<1x8x64xbf16>,
    %cst_7 = arith.constant dense<0.000000e+00> : vector<8xf32>
    %8 = vector.multi_reduction <add>, %3, %cst_7 [1] : vector<8x64xf32> to vector<8xf32>
    %9 = vector.shape_cast %8 : vector<8xf32> to vector<8x1xf32>
    %c0_8 = arith.constant 0 : index
    %c0_9 = arith.constant 0 : index
    %c0_10 = arith.constant 0 : index
    %c0_11 = arith.constant 0 : index
    %10 = vector.load %arg5[%c0_8, %c0_9, %c0_10, %c0_11] : memref<1x1x8x1xf32, #tpu.memory_space<vmem>>, vector<1x1x8x1xf32>
    %11 = vector.shape_cast %10 : vector<1x1x8x1xf32> to vector<8x1xf32>
    %12 = vector.shape_cast %9 : vector<8x1xf32> to vector<1x1x8x1xf32>
    tpu.vector_store %arg5[%c0_8, %c0_9, %c0_10, %c0_11], %12 {strides = array<i32>} : memref<1x1x8x1xf32, #tpu.memory_space<vmem>>, vector<1x1x8x1xf32>,
    %13 = arith.mulf %3, %3 : vector<8x64xf32>
    %cst_12 = arith.constant dense<0.000000e+00> : vector<8xf32>
    %14 = vector.multi_reduction <add>, %13, %cst_12 [1] : vector<8x64xf32> to vector<8xf32>
    %15 = vector.shape_cast %14 : vector<8xf32> to vector<8x1xf32>
    %c0_13 = arith.constant 0 : index
    %c0_14 = arith.constant 0 : index
    %c0_15 = arith.constant 0 : index
    %c0_16 = arith.constant 0 : index
    %16 = vector.load %arg6[%c0_13, %c0_14, %c0_15, %c0_16] : memref<1x1x8x1xf32, #tpu.memory_space<vmem>>, vector<1x1x8x1xf32>
    %17 = vector.shape_cast %16 : vector<1x1x8x1xf32> to vector<8x1xf32>
    %18 = vector.shape_cast %15 : vector<8x1xf32> to vector<1x1x8x1xf32>
    tpu.vector_store %arg6[%c0_13, %c0_14, %c0_15, %c0_16], %18 {strides = array<i32>} : memref<1x1x8x1xf32, #tpu.memory_space<vmem>>, vector<1x1x8x1xf32>,
    return
  }
  func.func @transform_0(%arg0: i32, %arg1: i32) -> (i32, i32, i32) {
    %c0_i32 = arith.constant 0 : i32
    %c0_i32_0 = arith.constant 0 : i32
    return %arg0, %c0_i32, %arg1 : i32, i32, i32
  }
  func.func @transform_1(%arg0: i32, %arg1: i32) -> (i32, i32) {
    %c0_i32 = arith.constant 0 : i32
    %c0_i32_0 = arith.constant 0 : i32
    %c0_i32_1 = arith.constant 0 : i32
    return %c0_i32, %c0_i32_0 : i32, i32
  }
  func.func @transform_2(%arg0: i32, %arg1: i32) -> (i32, i32, i32) {
    %c0_i32 = arith.constant 0 : i32
    %c0_i32_0 = arith.constant 0 : i32
    return %arg0, %c0_i32, %arg1 : i32, i32, i32
  }
  func.func @transform_3(%arg0: i32, %arg1: i32) -> (i32, i32, i32, i32) {
    %c0_i32 = arith.constant 0 : i32
    %c0_i32_0 = arith.constant 0 : i32
    %c0_i32_1 = arith.constant 0 : i32
    return %arg0, %arg1, %c0_i32, %c0_i32_0 : i32, i32, i32, i32
  }
  func.func @transform_4(%arg0: i32, %arg1: i32) -> (i32, i32, i32, i32) {
    %c0_i32 = arith.constant 0 : i32
    %c0_i32_0 = arith.constant 0 : i32
    %c0_i32_1 = arith.constant 0 : i32
    return %arg0, %arg1, %c0_i32, %c0_i32_0 : i32, i32, i32, i32
  }
}

module attributes {stable_mosaic.version = 11 : i64} {
  func.func @_norm_relu_kernel(%arg0: i32, %arg1: i32, %arg2: memref<1x8x64xbf16, #tpu.memory_space<vmem>>, %arg3: memref<8x1xf32, #tpu.memory_space<vmem>>, %arg4: memref<8x1xf32, #tpu.memory_space<vmem>>, %arg5: memref<1x8x64xf32, #tpu.memory_space<vmem>>) attributes {dimension_semantics = [#tpu.dimension_semantics<parallel>, #tpu.dimension_semantics<parallel>], iteration_bounds = array<i64: 2, 1>, scalar_prefetch = 0 : i64, scratch_operands = 0 : i64, tpu.core_type = #tpu.core_type<tc>, window_params = [{transform_indices = @transform_0, window_bounds = array<i64: 1, 8, 64>}, {pipeline_mode = #tpu.pipeline_mode<synchronous>, transform_indices = @transform_1, window_bounds = array<i64: 8, 1>}, {pipeline_mode = #tpu.pipeline_mode<synchronous>, transform_indices = @transform_2, window_bounds = array<i64: 8, 1>}, {transform_indices = @transform_3, window_bounds = array<i64: 1, 8, 64>}]} {
    %c0 = arith.constant 0 : index
    %c0_0 = arith.constant 0 : index
    %c0_1 = arith.constant 0 : index
    %0 = vector.load %arg2[%c0, %c0_0, %c0_1] : memref<1x8x64xbf16, #tpu.memory_space<vmem>>, vector<1x8x64xbf16>
    %1 = vector.shape_cast %0 : vector<1x8x64xbf16> to vector<8x64xbf16>
    %2 = arith.extf %1 : vector<8x64xbf16> to vector<8x64xf32>
    %c0_2 = arith.constant 0 : index
    %c0_3 = arith.constant 0 : index
    %3 = vector.load %arg3[%c0_2, %c0_3] : memref<8x1xf32, #tpu.memory_space<vmem>>, vector<8x1xf32>
    %4 = vector.broadcast %3 : vector<8x1xf32> to vector<8x64xf32>
    %5 = arith.mulf %2, %4 : vector<8x64xf32>
    %c0_4 = arith.constant 0 : index
    %c0_5 = arith.constant 0 : index
    %6 = vector.load %arg4[%c0_4, %c0_5] : memref<8x1xf32, #tpu.memory_space<vmem>>, vector<8x1xf32>
    %7 = vector.broadcast %6 : vector<8x1xf32> to vector<8x64xf32>
    %8 = arith.addf %5, %7 : vector<8x64xf32>
    %cst = arith.constant 0.000000e+00 : f32
    %9 = vector.broadcast %cst : f32 to vector<8x64xf32>
    %10 = arith.maximumf %8, %9 : vector<8x64xf32>
    %c0_6 = arith.constant 0 : index
    %c0_7 = arith.constant 0 : index
    %c0_8 = arith.constant 0 : index
    %11 = vector.load %arg5[%c0_6, %c0_7, %c0_8] : memref<1x8x64xf32, #tpu.memory_space<vmem>>, vector<1x8x64xf32>
    %12 = vector.shape_cast %11 : vector<1x8x64xf32> to vector<8x64xf32>
    %13 = vector.shape_cast %10 : vector<8x64xf32> to vector<1x8x64xf32>
    tpu.vector_store %arg5[%c0_6, %c0_7, %c0_8], %13 {strides = array<i32>} : memref<1x8x64xf32, #tpu.memory_space<vmem>>, vector<1x8x64xf32>,
    return
  }
  func.func @transform_0(%arg0: i32, %arg1: i32) -> (i32, i32, i32) {
    %c0_i32 = arith.constant 0 : i32
    %c0_i32_0 = arith.constant 0 : i32
    return %arg0, %c0_i32, %arg1 : i32, i32, i32
  }
  func.func @transform_1(%arg0: i32, %arg1: i32) -> (i32, i32) {
    %c0_i32 = arith.constant 0 : i32
    %c0_i32_0 = arith.constant 0 : i32
    %c0_i32_1 = arith.constant 0 : i32
    return %c0_i32, %c0_i32_0 : i32, i32
  }
  func.func @transform_2(%arg0: i32, %arg1: i32) -> (i32, i32) {
    %c0_i32 = arith.constant 0 : i32
    %c0_i32_0 = arith.constant 0 : i32
    %c0_i32_1 = arith.constant 0 : i32
    return %c0_i32, %c0_i32_0 : i32, i32
  }
  func.func @transform_3(%arg0: i32, %arg1: i32) -> (i32, i32, i32) {
    %c0_i32 = arith.constant 0 : i32
    %c0_i32_0 = arith.constant 0 : i32
    return %arg0, %c0_i32, %arg1 : i32, i32, i32
  }
}

</mosaic_0001>

<bundles_post_ra>
// kernel: block_forward.3
= control target key start
LH: loop header
LB: loop body
LE: loop exit
PB: predicated region body
PF: predicated region fallthrough
CT: control target
= control target key end

     0   :  { %s370_s12 = smov 0   ;;  %s372_s13 = smov 0   ;;  %s406_s0 = inlined_call_operand.vmem [shape: bf16[2,8,64], index: 0, kind: input, shape index: {}]   ;;  %s407_s1 = inlined_call_operand.vmem [shape: f32[8,1], index: 1, kind: input, shape index: {}]   ;;  %s408_s2 = inlined_call_operand.vmem [shape: f32[8,1], index: 2, kind: input, shape index: {}]   ;;  %s409_s3 = inlined_call_operand.vmem [shape: f32[2,8,64], index: 3, kind: output, shape index: {}]  }
   0x1   :  { %s374_s14 = smov 0  }
   0x2 LB: > { %s25_s15 = sadd.s32 1, %s343_s13  ;;  %p294_p0 = scmp.ge.s32.totalorder %s347_s14, 1  ;;  %s347_s14 = sphi %s374_s14, %s13_s14   ;;  %s343_s13 = sphi %s372_s13, %s411_s13   ;;  %s339_s12 = sphi %s370_s12, %s410_s12  }
   0x3   : > { %p27_p1 = scmp.ge.s32.totalorder %s25_s15, 2  ;;  %p155_p2 = scmp.lt.s32.totalorder %s347_s14, 3 }
   0x5   : > { %s413_s15 = smov (%p27_p1, %s25_s15), 0  ;;  %p156_p3 = pnand %p294_p0, %p155_p2 }
   0x6   : > { %v199_v0 = vld [vmem:[%s407_s1] sm:$0xff] (!%p156_p3)  ;;  %v349_v1 = vmov (!%p156_p3), 0   ;;  %p183_p4 = scmp.lt.s32.totalorder (!%p156_p3), %s339_s12, 1  ;;  %vm214_vm0 = vcmask (!%p156_p3), 523264  }
   0x7   : > { %159 = sbr.rel (%p156_p3) target bundleno = 145 (0x91), region = 32  ;;  %324 = vset.pattern.permute.xlu0 (!%p156_p3), %v349_v1  ;;  %v206_v2 = vld [vmem:[%s408_s2] sm:$0xff] (!%p156_p3) }
   0x8   : > { %202 = vperm.xlu0 (!%p156_p3), %324, %v199_v0  }
   0xc   : > { %209 = vperm.xlu0 (!%p156_p3), %324, %v206_v2  }
   0xe   : > { %s415_s12 = smov (!%p183_p4, %s339_s12), 1 }
   0xf   : > { %s295_s20 = sshll.u32 %s415_s12, 2  ;;  %s296_s24 = sshll.u32 %s415_s12, 3 }
  0x10   : > { %s189_s23 = scalar_lea.vmem %s406_s0, %s295_s20  ;;  %s196_s27 = scalar_lea.vmem %s409_s3, %s296_s24 }
  0x11   : > { %v197_v3 = vld [vmem:[%s189_s23] sm:$0xf] }
  0x12   : > { %v198_v4 = vunpack.c.l.bf16 %v197_v3 }
  0x87   : > { %v203_v5 = vpop.permute.xlu0 %202 }
  0x88   : > { %v205_v6 = vmul.f32 %v203_v5, %v198_v4 }
  0x8b   : > { %v210_v7 = vpop.permute.xlu0 %209 }
  0x8c   : > { %v212_v8 = vadd.f32 %v210_v7, %v205_v6 }
  0x8e   : > { %v213_v9 = vmax.f32 %v212_v8, 0.0 }
  0x90   : > { %215 = vst.msk [vmem:[%s196_s27] sm:$0xff] %vm214_vm0, %v213_v9 }
  0x91 PF: > { %s13_s14 = sadd.s32 1, %s347_s14   ;;  %s410_s12 = smov %s343_s13 }
  0x92   : > { %p10_p5 = scmp.ge.s32.totalorder %s13_s14, 4   ;;  %s411_s13 = smov %s413_s15 }
  0x94   :  { %12 = sbr.rel (!%p10_p5) target bundleno = 2 (0x2), region = 62 }

// kernel: block_forward.2
= control target key start
LH: loop header
LB: loop body
LE: loop exit
PB: predicated region body
PF: predicated region fallthrough
CT: control target
= control target key end

     0   :  { %s630_s15 = smov 0   ;;  %s632_s16 = smov 0   ;;  %s677_s0 = inlined_call_operand.vmem [shape: bf16[2,64,64], index: 0, kind: input, shape index: {}]   ;;  %s678_s1 = inlined_call_operand.vmem [shape: bf16[8,64], index: 1, kind: input, shape index: {}]   ;;  %s679_s2 = inlined_call_operand.vmem [shape: bf16[2,8,64], index: 2, kind: output, shape index: {0}]   ;;  %s680_s3 = inlined_call_operand.vmem [shape: f32[2,1,8,1], index: 3, kind: output, shape index: {1}]   ;;  %s681_s4 = inlined_call_operand.vmem [shape: f32[2,1,8,1], index: 4, kind: output, shape index: {2}]  }
   0x1   :  { %s634_s17 = smov 0  }
   0x2 LB: > { %s27_s18 = sadd.s32 1, %s597_s16  ;;  %p518_p0 = scmp.ge.s32.totalorder %s601_s17, 1  ;;  %s601_s17 = sphi %s634_s17, %s15_s17   ;;  %s597_s16 = sphi %s632_s16, %s683_s16   ;;  %s593_s15 = sphi %s630_s15, %s682_s15  }
   0x3   : > { %p29_p1 = scmp.ge.s32.totalorder %s27_s18, 2  ;;  %p190_p2 = scmp.lt.s32.totalorder %s601_s17, 3 }
   0x5   : > { %s685_s18 = smov (%p29_p1, %s27_s18), 0  ;;  %p191_p3 = pnand %p518_p0, %p190_p2 }
   0x6   : > { %p235_p4 = scmp.lt.s32.totalorder (!%p191_p3), %s593_s15, 1  ;;  %v603_v0 = vmov (!%p191_p3), 0.0   ;;  %vm604_vm0 = vmmov (!%p191_p3), 0   ;;  %v265_v5 = vld [vmem:[%s678_s1] sm:$0xf] (!%p191_p3)  ;;  %vm298_vm1 = vcmask (!%p191_p3), 523264  }
   0x7   : > { %194 = sbr.rel (%p191_p3) target bundleno = 393 (0x189), region = 28  ;;  %537 = vmatprep.subr.bf16.mxu0 (!%p191_p3), %v603_v0  ;;  %545 = vmatprep.mubr.msk.bf16.mxu0 (!%p191_p3), %vm604_vm0, %v603_v0  ;;  %vm343_vm2 = vcmask (!%p191_p3), 519168   ;;  %vm348_vm3 = vcmask (!%p191_p3), 7168  }
   0xe   : > { %s687_s15 = smov (!%p235_p4, %s593_s15), 1 }
   0xf   : > { %s531_s19 = sshll.u32 %s687_s15, 5  ;;  %s521_s25 = sshll.u32 %s687_s15, 2 }
  0x10   : > { %s242_s22 = scalar_lea.vmem %s677_s0, %s531_s19  ;;  %s249_s28 = scalar_lea.vmem %s679_s2, %s521_s25 }
  0x11   : > { %v575_v1 = vld [vmem:[%s242_s22] sm:$0xff]   ;;  %v576_v2 = vld [vmem:[%s242_s22 + $0x8] sm:$0xff]   ;;  %v577_v3 = vld [vmem:[%s242_s22 + $0x10] sm:$0xff]   ;;  %s522_s29 = sshll.u32 %s687_s15, 3 }
  0x12   : > { %538 = vmatpush3.bf16.msra.mxu0 %v575_v1  ;;  %v578_v4 = vld [vmem:[%s242_s22 + $0x18] sm:$0xff]   ;;  %s256_s6 = scalar_lea.vmem %s680_s3, %s522_s29  ;;  %s263_s9 = scalar_lea.vmem %s681_s4, %s522_s29 }
  0x13   : > { %539 = vmatprep.subr.bf16.mxu0 %v603_v0 }
  0x16   : > { %540 = vmatpush3.bf16.msra.mxu0 %v576_v2 }
  0x17   : > { %541 = vmatprep.subr.bf16.mxu0 %v603_v0 }
  0x1a   : > { %542 = vmatpush3.bf16.msra.mxu0 %v577_v3 }
  0x1b   : > { %543 = vmatprep.subr.bf16.mxu0 %v603_v0 }
  0x1e   : > { %544 = vmatpush3.bf16.msra.mxu0 %v578_v4 }
  0x21   : > { %546 = vmatmul.mubr.msk.bf16.vlgmr.msra.gmra.mrb[0].mxu0 %vm298_vm1, %v265_v5 }
  0xf4   : > { %v336_v6 = vpop.f32.mrb[0].mxu0 }
  0xf5   : > { %v342_v7 = vpack.c.bf16 %v336_v6, %v336_v6  ;;  %v547_v8 = vpop.f32.mrb[1].mxu0  ;;  %v345_v9 = vsel %vm298_vm1, %v336_v6, 0.0  ;;  %v350_v10 = vmul.f32 %v336_v6, %v336_v6 }
  0xf6   : > { %346 = vadd.xlane.f32.xlu0 %v345_v9  ;;  %v339_v11 = vpop.f32.mrb[2].mxu0 }
  0xf7   : > { %344 = vst.msk [vmem:[%s249_s28] sm:$0xf] %vm343_vm2, %v342_v7  ;;  %v548_v12 = vpop.f32.mrb[3].mxu0  ;;  %v351_v13 = vsel %vm298_vm1, %v350_v10, 0.0 }
  0xfa   : > { %352 = vadd.xlane.f32.xlu0 %v351_v13 }
 0x183   : > { %v347_v14 = vpop.xlane.xlu0 %346 }
 0x184   : > { %349 = vst.msk [vmem:[%s256_s6] sm:$0xff] %vm348_vm3, %v347_v14 }
 0x187   : > { %v353_v15 = vpop.xlane.xlu0 %352 }
 0x188   : > { %354 = vst.msk [vmem:[%s263_s9] sm:$0xff] %vm348_vm3, %v353_v15 }
 0x189 PF: > { %s15_s17 = sadd.s32 1, %s601_s17   ;;  %s682_s15 = smov %s597_s16 }
 0x18a   : > { %p12_p5 = scmp.ge.s32.totalorder %s15_s17, 4   ;;  %s683_s16 = smov %s685_s18 }
 0x18c   :  { %14 = sbr.rel (!%p12_p5) target bundleno = 2 (0x2), region = 82 }

</bundles_post_ra>
